<compile_context>
chip_gen: v5e
topology: v5e:2x2
jax: 0.10.0
libtpu: 0.0.40
codegen_flags: <defaults>
</compile_context>

<pallas_src>
import jax
import jax.numpy as jnp
from jax import lax
from jax.experimental import pallas as pl
from jax.experimental.pallas import tpu as pltpu


def _mlp_kernel(audio_ref, wid_ref,
                w1a_ref, embw1_ref, b1_ref,
                w2_ref, b2_ref, w3_ref, b3_ref,
                out_ref):
    # --- fused embedding gather + W1_word projection (one-hot MXU dot) -------
    ids = wid_ref[...]                                        # [tb, 1] int32
    tb = ids.shape[0]
    vocab = embw1_ref.shape[0]
    onehot = (lax.broadcasted_iota(jnp.int32, (tb, vocab), 1) == ids
              ).astype(jnp.float32)                           # [tb, vocab]

    # --- h1 = audio @ W1_audio + onehot @ (emb @ W1_word) + b1 ---------------
    audio = audio_ref[...].astype(jnp.float32)
    h1 = jnp.dot(audio, w1a_ref[...], preferred_element_type=jnp.float32)
    h1 = h1 + jnp.dot(onehot, embw1_ref[...],
                      preferred_element_type=jnp.float32)
    h1 = jnp.maximum(h1 + b1_ref[...], 0.0)
    # TODO(synk): training-mode Dropout(0.3) omitted (eval semantics: identity).

    # --- Linear -> ReLU -------------------------------------------------------
    h2 = jnp.dot(h1, w2_ref[...], preferred_element_type=jnp.float32) + b2_ref[...]
    h2 = jnp.maximum(h2, 0.0)

    # --- Final Linear: exact-width store (no lane padding of the output) -----
    out_ref[...] = (jnp.dot(h2, w3_ref[...], preferred_element_type=jnp.float32)
                    + b3_ref[...])


def prepare_params(params, audio_dim):
    """One-time weight prep: split W1, fold emb @ W1_word, reshape biases."""
    emb = params["emb"].astype(jnp.float32)
    w1 = params["w1"].astype(jnp.float32)
    w1a = w1[:audio_dim, :]                                   # [audio_dim, hidden]
    emb_w1 = emb @ w1[audio_dim:, :]                          # [vocab, hidden]

    def row(b):
        return jnp.asarray(b, jnp.float32).reshape(1, -1)

    return {
        "w1a": w1a,
        "emb_w1": emb_w1,
        "b1": row(params["b1"]),
        "w2": params["w2"].astype(jnp.float32),
        "b2": row(params["b2"]),
        "w3": params["w3"].astype(jnp.float32),
        "b3": row(params["b3"]),
    }


def word_level_regressor_with_text(audio_emb, word_ids, prepped, *,
                                   batch_tile=1024, stream_bf16=False):
    """Forward pass equivalent to WordLevelRegressorWithText.forward (eval mode)."""
    B, audio_dim = audio_emb.shape
    vocab, hidden = prepped["emb_w1"].shape
    out_dim = prepped["w3"].shape[1]

    in_dtype = jnp.bfloat16 if stream_bf16 else jnp.float32
    audio_emb = audio_emb.astype(in_dtype)

    # ---- batch tiling: multiple of 8 sublanes, >= 2 grid steps when possible -
    b_ceil = max(8, ((B + 7) // 8) * 8)
    tb = max(8, (min(batch_tile, b_ceil) // 8) * 8)
    if b_ceil > 8 and pl.cdiv(b_ceil, tb) < 2:
        # Keep at least two grid steps so "parallel" shards across both TCs (v7x).
        tb = max(8, (((b_ceil + 1) // 2) + 7) // 8 * 8)
    n_tiles = pl.cdiv(b_ceil, tb)
    b_pad = n_tiles * tb

    if b_pad != B:
        audio_emb = jnp.pad(audio_emb, ((0, b_pad - B), (0, 0)))
        word_ids = jnp.pad(word_ids, (0, b_pad - B))
    wid2d = word_ids.astype(jnp.int32).reshape(b_pad, 1)

    def resident(shape):
        # Weights / biases / folded table: same block every grid step (load once).
        return pl.BlockSpec(shape, lambda i: (0, 0))

    # ---- VMEM budget: only raise the scoped limit when the footprint needs it.
    act_bytes = 2 if stream_bf16 else 4
    est_vmem = (2 * tb * (audio_dim * act_bytes + 4 + out_dim * 4)     # dbl-buffered I/O
                + 2 * 4 * (audio_dim * hidden + vocab * hidden
                           + hidden * hidden + hidden * out_dim
                           + 2 * hidden + out_dim)                     # resident weights
                + 4 * tb * (vocab + 2 * hidden + out_dim))             # in-kernel temps
    cp_kwargs = dict(dimension_semantics=("parallel",))                # megacore (v7x)
    if est_vmem > (16 << 20):   # v5e scoped-VMEM default
        cp_kwargs["vmem_limit_bytes"] = min(64 << 20, int(est_vmem * 1.5))

    out = pl.pallas_call(
        _mlp_kernel,
        out_shape=jax.ShapeDtypeStruct((b_pad, out_dim), jnp.float32),
        grid=(n_tiles,),
        in_specs=[
            pl.BlockSpec((tb, audio_dim), lambda i: (i, 0)),   # streamed activations
            pl.BlockSpec((tb, 1), lambda i: (i, 0)),           # streamed word ids
            resident((audio_dim, hidden)),                     # W1 (audio half)
            resident((vocab, hidden)),                         # emb @ W1_word (folded)
            resident((1, hidden)),                             # b1
            resident((hidden, hidden)),                        # W2
            resident((1, hidden)),                             # b2
            resident((hidden, out_dim)),                       # W3 (exact width)
            resident((1, out_dim)),                            # b3 (exact width)
        ],
        out_specs=pl.BlockSpec((tb, out_dim), lambda i: (i, 0)),
        compiler_params=pltpu.CompilerParams(**cp_kwargs),
    )(audio_emb, wid2d,
      prepped["w1a"], prepped["emb_w1"], prepped["b1"],
      prepped["w2"], prepped["b2"], prepped["w3"], prepped["b3"])

    return out[:B]


def init_params(key, vocab_size, audio_dim, word_emb_dim, hidden_dim, output_dim):
    """Deterministic init mirroring nn.Embedding / nn.Linear default shapes."""
    ks = jax.random.split(key, 7)

    def linear(kw, kb, fan_in, fan_out):
        bound = 1.0 / jnp.sqrt(fan_in)
        w = jax.random.uniform(kw, (fan_in, fan_out), jnp.float32, -bound, bound)
        b = jax.random.uniform(kb, (1, fan_out), jnp.float32, -bound, bound)
        return w, b

    emb = jax.random.normal(ks[0], (vocab_size, word_emb_dim), jnp.float32)
    w1, b1 = linear(ks[1], ks[2], audio_dim + word_emb_dim, hidden_dim)
    w2, b2 = linear(ks[3], ks[4], hidden_dim, hidden_dim)
    w3, b3 = linear(ks[5], ks[6], hidden_dim, output_dim)
    return {"emb": emb, "w1": w1, "b1": b1, "w2": w2, "b2": b2,
            "w3": w3, "b3": b3}


def reference_forward(audio_emb, word_ids, params):
    """Pure-JAX reference (eval-mode dropout = identity)."""
    wv = jnp.take(params["emb"], word_ids, axis=0)
    x = jnp.concatenate([audio_emb, wv], axis=-1)
    h1 = jnp.maximum(x @ params["w1"] + params["b1"], 0.0)
    h2 = jnp.maximum(h1 @ params["w2"] + params["b2"], 0.0)
    return h2 @ params["w3"] + params["b3"]


if __name__ == "__main__":
    # Small shapes consistent with the module's forward.
    B = 16
    VOCAB = 100
    AUDIO_DIM = 32
    WORD_EMB_DIM = 16
    HIDDEN_DIM = 32
    OUTPUT_DIM = 2

    key = jax.random.PRNGKey(0)
    k_params, k_audio, k_ids = jax.random.split(key, 3)

    params = init_params(k_params, VOCAB, AUDIO_DIM, WORD_EMB_DIM,
                         HIDDEN_DIM, OUTPUT_DIM)
    prepped = prepare_params(params, AUDIO_DIM)

    audio_emb = jax.random.normal(k_audio, (B, AUDIO_DIM), jnp.float32)
    word_ids = jax.random.randint(k_ids, (B,), 0, VOCAB, jnp.int32)

    out = word_level_regressor_with_text(audio_emb, word_ids, prepped)
    out = jax.block_until_ready(out)

    ref = reference_forward(audio_emb, word_ids, params)
    assert out.shape == (B, OUTPUT_DIM), out.shape
    assert jnp.allclose(out, ref, atol=1e-5, rtol=1e-5), "mismatch vs reference"

    print("KERNEL_OK")
</pallas_src>

<mosaic_0001>
module attributes {stable_mosaic.version = 11 : i64} {
  func.func @_mlp_kernel(%arg0: i32, %arg1: memref<8x32xf32, #tpu.memory_space<vmem>>, %arg2: memref<8x1xi32, #tpu.memory_space<vmem>>, %arg3: memref<32x32xf32, #tpu.memory_space<vmem>>, %arg4: memref<100x32xf32, #tpu.memory_space<vmem>>, %arg5: memref<1x32xf32, #tpu.memory_space<vmem>>, %arg6: memref<32x32xf32, #tpu.memory_space<vmem>>, %arg7: memref<1x32xf32, #tpu.memory_space<vmem>>, %arg8: memref<32x2xf32, #tpu.memory_space<vmem>>, %arg9: memref<1x2xf32, #tpu.memory_space<vmem>>, %arg10: memref<8x2xf32, #tpu.memory_space<vmem>>) attributes {dimension_semantics = [#tpu.dimension_semantics<parallel>], iteration_bounds = array<i64: 2>, scalar_prefetch = 0 : i64, scratch_operands = 0 : i64, tpu.core_type = #tpu.core_type<tc>, window_params = [{transform_indices = @transform_0, window_bounds = array<i64: 8, 32>}, {transform_indices = @transform_1, window_bounds = array<i64: 8, 1>}, {pipeline_mode = #tpu.pipeline_mode<synchronous>, transform_indices = @transform_2, window_bounds = array<i64: 32, 32>}, {pipeline_mode = #tpu.pipeline_mode<synchronous>, transform_indices = @transform_3, window_bounds = array<i64: 100, 32>}, {pipeline_mode = #tpu.pipeline_mode<synchronous>, transform_indices = @transform_4, window_bounds = array<i64: 1, 32>}, {pipeline_mode = #tpu.pipeline_mode<synchronous>, transform_indices = @transform_5, window_bounds = array<i64: 32, 32>}, {pipeline_mode = #tpu.pipeline_mode<synchronous>, transform_indices = @transform_6, window_bounds = array<i64: 1, 32>}, {pipeline_mode = #tpu.pipeline_mode<synchronous>, transform_indices = @transform_7, window_bounds = array<i64: 32, 2>}, {pipeline_mode = #tpu.pipeline_mode<synchronous>, transform_indices = @transform_8, window_bounds = array<i64: 1, 2>}, {transform_indices = @transform_9, window_bounds = array<i64: 8, 2>}]} {
    %c0 = arith.constant 0 : index
    %c0_0 = arith.constant 0 : index
    %0 = vector.load %arg2[%c0, %c0_0] : memref<8x1xi32, #tpu.memory_space<vmem>>, vector<8x1xi32>
    %1 = tpu.iota {dimensions = array<i32: 1>} : vector<8x100xi32>
    %2 = vector.broadcast %0 : vector<8x1xi32> to vector<8x100xi32>
    %3 = arith.cmpi eq, %1, %2 : vector<8x100xi32>
    %4 = arith.extui %3 : vector<8x100xi1> to vector<8x100xi32>
    %5 = arith.sitofp %4 : vector<8x100xi32> to vector<8x100xf32>
    %c0_1 = arith.constant 0 : index
    %c0_2 = arith.constant 0 : index
    %6 = vector.load %arg1[%c0_1, %c0_2] : memref<8x32xf32, #tpu.memory_space<vmem>>, vector<8x32xf32>
    %c0_3 = arith.constant 0 : index
    %c0_4 = arith.constant 0 : index
    %7 = vector.load %arg3[%c0_3, %c0_4] : memref<32x32xf32, #tpu.memory_space<vmem>>, vector<32x32xf32>
    %cst = arith.constant dense<0.000000e+00> : vector<8x32xf32>
    %8 = tpu.matmul %6, %7, %cst {dimension_numbers = #tpu.dot_dimension_numbers<[1], [0], [0], [1], [0, 0, 1, 1], [], []>} : vector<8x32xf32>, vector<32x32xf32>, vector<8x32xf32> -> vector<8x32xf32>
    %c0_5 = arith.constant 0 : index
    %c0_6 = arith.constant 0 : index
    %9 = vector.load %arg4[%c0_5, %c0_6] : memref<100x32xf32, #tpu.memory_space<vmem>>, vector<100x32xf32>
    %cst_7 = arith.constant dense<0.000000e+00> : vector<8x32xf32>
    %10 = tpu.matmul %5, %9, %cst_7 {dimension_numbers = #tpu.dot_dimension_numbers<[1], [0], [0], [1], [0, 0, 1, 1], [], []>} : vector<8x100xf32>, vector<100x32xf32>, vector<8x32xf32> -> vector<8x32xf32>
    %11 = arith.addf %8, %10 : vector<8x32xf32>
    %c0_8 = arith.constant 0 : index
    %c0_9 = arith.constant 0 : index
    %12 = vector.load %arg5[%c0_8, %c0_9] : memref<1x32xf32, #tpu.memory_space<vmem>>, vector<1x32xf32>
    %13 = vector.broadcast %12 : vector<1x32xf32> to vector<8x32xf32>
    %14 = arith.addf %11, %13 : vector<8x32xf32>
    %cst_10 = arith.constant 0.000000e+00 : f32
    %15 = vector.broadcast %cst_10 : f32 to vector<8x32xf32>
    %16 = arith.maximumf %14, %15 : vector<8x32xf32>
    %c0_11 = arith.constant 0 : index
    %c0_12 = arith.constant 0 : index
    %17 = vector.load %arg6[%c0_11, %c0_12] : memref<32x32xf32, #tpu.memory_space<vmem>>, vector<32x32xf32>
    %cst_13 = arith.constant dense<0.000000e+00> : vector<8x32xf32>
    %18 = tpu.matmul %16, %17, %cst_13 {dimension_numbers = #tpu.dot_dimension_numbers<[1], [0], [0], [1], [0, 0, 1, 1], [], []>} : vector<8x32xf32>, vector<32x32xf32>, vector<8x32xf32> -> vector<8x32xf32>
    %c0_14 = arith.constant 0 : index
    %c0_15 = arith.constant 0 : index
    %19 = vector.load %arg7[%c0_14, %c0_15] : memref<1x32xf32, #tpu.memory_space<vmem>>, vector<1x32xf32>
    %20 = vector.broadcast %19 : vector<1x32xf32> to vector<8x32xf32>
    %21 = arith.addf %18, %20 : vector<8x32xf32>
    %cst_16 = arith.constant 0.000000e+00 : f32
    %22 = vector.broadcast %cst_16 : f32 to vector<8x32xf32>
    %23 = arith.maximumf %21, %22 : vector<8x32xf32>
    %c0_17 = arith.constant 0 : index
    %c0_18 = arith.constant 0 : index
    %24 = vector.load %arg8[%c0_17, %c0_18] : memref<32x2xf32, #tpu.memory_space<vmem>>, vector<32x2xf32>
    %cst_19 = arith.constant dense<0.000000e+00> : vector<8x2xf32>
    %25 = tpu.matmul %23, %24, %cst_19 {dimension_numbers = #tpu.dot_dimension_numbers<[1], [0], [0], [1], [0, 0, 1, 1], [], []>} : vector<8x32xf32>, vector<32x2xf32>, vector<8x2xf32> -> vector<8x2xf32>
    %c0_20 = arith.constant 0 : index
    %c0_21 = arith.constant 0 : index
    %26 = vector.load %arg9[%c0_20, %c0_21] : memref<1x2xf32, #tpu.memory_space<vmem>>, vector<1x2xf32>
    %27 = vector.broadcast %26 : vector<1x2xf32> to vector<8x2xf32>
    %28 = arith.addf %25, %27 : vector<8x2xf32>
    %c0_22 = arith.constant 0 : index
    %c0_23 = arith.constant 0 : index
    %29 = vector.load %arg10[%c0_22, %c0_23] : memref<8x2xf32, #tpu.memory_space<vmem>>, vector<8x2xf32>
    tpu.vector_store %arg10[%c0_22, %c0_23], %28 {strides = array<i32>} : memref<8x2xf32, #tpu.memory_space<vmem>>, vector<8x2xf32>,
    return
  }
  func.func @transform_0(%arg0: i32) -> (i32, i32) {
    %c0_i32 = arith.constant 0 : i32
    %c0_i32_0 = arith.constant 0 : i32
    return %arg0, %c0_i32 : i32, i32
  }
  func.func @transform_1(%arg0: i32) -> (i32, i32) {
    %c0_i32 = arith.constant 0 : i32
    %c0_i32_0 = arith.constant 0 : i32
    return %arg0, %c0_i32 : i32, i32
  }
  func.func @transform_2(%arg0: i32) -> (i32, i32) {
    %c0_i32 = arith.constant 0 : i32
    %c0_i32_0 = arith.constant 0 : i32
    %c0_i32_1 = arith.constant 0 : i32
    return %c0_i32, %c0_i32_0 : i32, i32
  }
  func.func @transform_3(%arg0: i32) -> (i32, i32) {
    %c0_i32 = arith.constant 0 : i32
    %c0_i32_0 = arith.constant 0 : i32
    %c0_i32_1 = arith.constant 0 : i32
    return %c0_i32, %c0_i32_0 : i32, i32
  }
  func.func @transform_4(%arg0: i32) -> (i32, i32) {
    %c0_i32 = arith.constant 0 : i32
    %c0_i32_0 = arith.constant 0 : i32
    %c0_i32_1 = arith.constant 0 : i32
    return %c0_i32, %c0_i32_0 : i32, i32
  }
  func.func @transform_5(%arg0: i32) -> (i32, i32) {
    %c0_i32 = arith.constant 0 : i32
    %c0_i32_0 = arith.constant 0 : i32
    %c0_i32_1 = arith.constant 0 : i32
    return %c0_i32, %c0_i32_0 : i32, i32
  }
  func.func @transform_6(%arg0: i32) -> (i32, i32) {
    %c0_i32 = arith.constant 0 : i32
    %c0_i32_0 = arith.constant 0 : i32
    %c0_i32_1 = arith.constant 0 : i32
    return %c0_i32, %c0_i32_0 : i32, i32
  }
  func.func @transform_7(%arg0: i32) -> (i32, i32) {
    %c0_i32 = arith.constant 0 : i32
    %c0_i32_0 = arith.constant 0 : i32
    %c0_i32_1 = arith.constant 0 : i32
    return %c0_i32, %c0_i32_0 : i32, i32
  }
  func.func @transform_8(%arg0: i32) -> (i32, i32) {
    %c0_i32 = arith.constant 0 : i32
    %c0_i32_0 = arith.constant 0 : i32
    %c0_i32_1 = arith.constant 0 : i32
    return %c0_i32, %c0_i32_0 : i32, i32
  }
  func.func @transform_9(%arg0: i32) -> (i32, i32) {
    %c0_i32 = arith.constant 0 : i32
    %c0_i32_0 = arith.constant 0 : i32
    return %arg0, %c0_i32 : i32, i32
  }
}

</mosaic_0001>

<bundles_post_ra>
// kernel: tpu_custom_call.1
= control target key start
LH: loop header
LB: loop body
LE: loop exit
PB: predicated region body
PF: predicated region fallthrough
CT: control target
= control target key end

     0   :  { %s650_s30 = smov 0   ;;  %s762_s0 = inlined_call_operand.vmem [shape: f32[16,32], index: 0, kind: input, shape index: {}]   ;;  %s763_s1 = inlined_call_operand.vmem [shape: s32[16,1], index: 1, kind: input, shape index: {}]   ;;  %s764_s2 = inlined_call_operand.vmem [shape: f32[32,32], index: 2, kind: input, shape index: {}]   ;;  %s765_s3 = inlined_call_operand.vmem [shape: f32[100,32], index: 3, kind: input, shape index: {}]   ;;  %s766_s4 = inlined_call_operand.vmem [shape: f32[1,32], index: 4, kind: input, shape index: {}]   ;;  %s767_s5 = inlined_call_operand.vmem [shape: f32[32,32], index: 5, kind: input, shape index: {}]   ;;  %s768_s6 = inlined_call_operand.vmem [shape: f32[1,32], index: 6, kind: input, shape index: {}]   ;;  %s769_s7 = inlined_call_operand.vmem [shape: f32[32,2], index: 7, kind: input, shape index: {}]   ;;  %s770_s8 = inlined_call_operand.vmem [shape: f32[1,2], index: 8, kind: input, shape index: {}]   ;;  %s771_s9 = inlined_call_operand.vmem [shape: f32[16,2], index: 9, kind: output, shape index: {}]  }
   0x1 LB: > { %s560_s10 = sadd.s32 4294967295, %s596_s30   ;;  %p564_p0 = scmp.ge.s32.totalorder %s596_s30, 1  ;;  %s596_s30 = sphi %s650_s30, %s19_s30  }
   0x2   : > { %p295_p1 = scmp.lt.s32.totalorder %s596_s30, 3 }
   0x4   : > { %p296_p2 = pnand %p564_p0, %p295_p1 }
   0x5   : > { %p333_p3 = scmp.lt.s32.totalorder (!%p296_p2), %s560_s10, 1 }
   0x6   : > { %299 = sbr.rel (%p296_p2) target bundleno = 535 (0x217), region = 56 }
   0xb   : > { %v371_v0 = vld [vmem:[%s765_s3 + $0x60] sm:$0xf]  ;;  %vm376_vm0 = vcmask 1043456   ;;  %v370_v1 = vld [vmem:[%s765_s3 + $0x58] sm:$0xff]  ;;  %v598_v2 = vmov 0   ;;  %s773_s10 = smov (!%p333_p3, %s560_s10), 1  ;;  %v346_v20 = vlaneseq }
   0xc   : > { %586 = vset.pattern.permute.xlu0 %v598_v2  ;;  %569 = vmatpush.msk.msra.mxu0 %vm376_vm0, %v371_v0  ;;  %v369_v3 = vld [vmem:[%s765_s3 + $0x50] sm:$0xff]  ;;  %v358_v4 = vld [vmem:[%s764_s2 + $0x18] sm:$0xff]  ;;  %s670_s19 = sshll.u32 %s773_s10, 3  ;;  %v368_v5 = vld [vmem:[%s765_s3 + $0x48] sm:$0xff]  ;;  %vm400_vm1 = vcmask 261120   ;;  %vm372_vm2 = vcmask 818176  }
   0xd   : > { %416 = vmatpush.msra.mxu1 %v358_v4  ;;  %v357_v6 = vld [vmem:[%s764_s2 + $0x10] sm:$0xff]  ;;  %s340_s26 = scalar_lea.vmem %s763_s1, %s670_s19  ;;  %v356_v7 = vld [vmem:[%s764_s2 + $0x8] sm:$0xff]  ;;  %v367_v9 = vld [vmem:[%s765_s3 + $0x40] sm:$0xff]  ;;  %s336_s28 = scalar_lea.vmem %s762_s0, %s670_s19  ;;  %v347_v21 = vand.u32 127, %v346_v20  ;;  %v599_v23 = vmov 0.0   ;;  %vm493_vm4 = vcmask 15360  }
   0xe   : > { %384 = vmatpush.msra.mxu0 %v370_v1  ;;  %v345_v8 = vld [vmem:[%s340_s26] sm:$0xff]  ;;  %v366_v10 = vld [vmem:[%s765_s3 + $0x38] sm:$0xff]  ;;  %v365_v11 = vld [vmem:[%s765_s3 + $0x30] sm:$0xff]  ;;  %s344_s18 = scalar_lea.vmem %s771_s9, %s670_s19 }
   0xf   : > { %417 = vmatpush.msra.mxu1 %v357_v6  ;;  %349 = vperm.xlu0 %586, %v345_v8   ;;  %v364_v12 = vld [vmem:[%s765_s3 + $0x28] sm:$0xff]  ;;  %v363_v13 = vld [vmem:[%s765_s3 + $0x20] sm:$0xff]  ;;  %v362_v14 = vld [vmem:[%s765_s3 + $0x18] sm:$0xff] }
  0x10   : > { %385 = vmatpush.msra.mxu0 %v369_v3  ;;  %v361_v15 = vld [vmem:[%s765_s3 + $0x10] sm:$0xff]  ;;  %v360_v16 = vld [vmem:[%s765_s3 + $0x8] sm:$0xff]  ;;  %v359_v17 = vld [vmem:[%s765_s3] sm:$0xff] }
  0x11   : > { %418 = vmatpush.msra.mxu1 %v356_v7  ;;  %v355_v18 = vld [vmem:[%s764_s2] sm:$0xff]  ;;  %v433_v25 = vld [vmem:[%s767_s5 + $0x18] sm:$0xff]  ;;  %v432_v26 = vld [vmem:[%s767_s5 + $0x10] sm:$0xff] }
  0x12   : > { %386 = vmatpush.msra.mxu0 %v368_v5  ;;  %v354_v19 = vld [vmem:[%s336_s28] sm:$0xff]  ;;  %453 = vmatpush.msra.mxu2 %v433_v25  ;;  %v431_v27 = vld [vmem:[%s767_s5 + $0x8] sm:$0xff]  ;;  %v465_v29 = vld [vmem:[%s769_s7 + $0x18] sm:$0xff] }
  0x13   : > { %419 = vmatpush.msra.mxu1 %v355_v18  ;;  %v430_v28 = vld [vmem:[%s767_s5] sm:$0xff]  ;;  %485 = vmatpush.msra.mxu3 %v465_v29  ;;  %v464_v36 = vld [vmem:[%s769_s7 + $0x10] sm:$0xff]  ;;  %v463_v37 = vld [vmem:[%s769_s7 + $0x8] sm:$0xff] }
  0x14   : > { %387 = vmatpush.msra.mxu0 %v367_v9  ;;  %571 = vmatmul.msk.f32.vlgmr.msra.gmra.mxu1 %vm400_vm1, %v354_v19  ;;  %v587_v31 = vld [vmem:[%s766_s4] ss:$0 sm:$0xff] }
  0x15   : > { %454 = vmatpush.msra.mxu2 %v432_v26  ;;  %486 = vmatpush.msra.mxu3 %v464_v36  ;;  %v462_v38 = vld [vmem:[%s769_s7] sm:$0xff] }
  0x16   : > { %388 = vmatpush.msra.mxu0 %v366_v10  ;;  %v588_v39 = vld [vmem:[%s768_s6] ss:$0 sm:$0xff] }
  0x17   : > { %455 = vmatpush.msra.mxu2 %v431_v27  ;;  %487 = vmatpush.msra.mxu3 %v463_v37  ;;  %v589_v43 = vld [vmem:[%s770_s8] ss:$0 sm:$0xff] }
  0x18   : > { %389 = vmatpush.msra.mxu0 %v365_v11 }
  0x19   : > { %456 = vmatpush.msra.mxu2 %v430_v28  ;;  %488 = vmatpush.msra.mxu3 %v462_v38 }
  0x1a   : > { %390 = vmatpush.msra.mxu0 %v364_v12 }
  0x1c   : > { %391 = vmatpush.msra.mxu0 %v363_v13 }
  0x1e   : > { %392 = vmatpush.msra.mxu0 %v362_v14 }
  0x20   : > { %393 = vmatpush.msra.mxu0 %v361_v15 }
  0x22   : > { %394 = vmatpush.msra.mxu0 %v360_v16 }
  0x24   : > { %395 = vmatpush.msra.mxu0 %v359_v17 }
  0x81   : > { %v350_v22 = vpop.permute.xlu0 %349 }
  0x82   : > { %vm351_vm3 = vcmp.eq.s32.totalorder %v347_v21, %v350_v22 }
  0x83   : > { %v568_v24 = vsel %vm351_vm3, 1.0, %v599_v23 }
  0x84   : > { %570 = vmatmul.msk.f32.vlgmr.msra.gmra.mxu0 %vm372_vm2, %v568_v24 }
  0x91   : > { %v421_v30 = vpop.f32.mrf.mxu1 }
 0x101   : > { %v397_v32 = vpop.f32.mrf.mxu0 }
 0x102   : > { %v422_v33 = vadd.f32 %v421_v30, %v397_v32 }
 0x104   : > { %v428_v34 = vadd.f32 %v587_v31, %v422_v33 }
 0x106   : > { %v429_v35 = vmax.f32 %v428_v34, 0.0 }
 0x108   : > { %572 = vmatmul.msk.f32.vlgmr.msra.gmra.mxu2 %vm400_vm1, %v429_v35 }
 0x18b   : > { %v458_v40 = vpop.f32.mrf.mxu2 }
 0x18c   : > { %v459_v41 = vadd.f32 %v588_v39, %v458_v40 }
 0x18e   : > { %v461_v42 = vmax.f32 %v459_v41, 0.0 }
 0x190   : > { %573 = vmatmul.msk.f32.vlgmr.msra.gmra.mxu3 %vm400_vm1, %v461_v42 }
 0x213   : > { %v490_v44 = vpop.f32.mrf.mxu3 }
 0x214   : > { %v491_v45 = vadd.f32 %v589_v43, %v490_v44 }
 0x216   : > { %494 = vst.msk [vmem:[%s344_s18] sm:$0xff] %vm493_vm4, %v491_v45 }
 0x217 PF: > { %s19_s30 = sadd.s32 1, %s596_s30  }
 0x218   : > { %p16_p4 = scmp.ge.s32.totalorder %s19_s30, 4  }
 0x21a   :  { %18 = sbr.rel (!%p16_p4) target bundleno = 1 (0x1), region = 89 }

</bundles_post_ra>
